<compile_context>
chip_gen: v6e
topology: v6e:2x2x1
jax: 0.10.0
libtpu: 0.0.40
codegen_flags: <defaults>
</compile_context>

<pallas_src>
import jax
import jax.numpy as jnp
import numpy as np
from jax import lax
from jax.experimental import pallas as pl
from jax.experimental.pallas import tpu as pltpu


# ----------------------- SpectralNorm parameter setup (glue) -----------------------

def _l2_normalize(v, axis, eps=1e-12):
    return v / (jnp.linalg.norm(v, axis=axis, keepdims=True) + eps)


def spectral_norm_1x1_conv(w2, key, power_iterations=2):
    """Replicates SpectralNorm (_make_params + _update_u) for a 1x1 conv weight.

    w2: (out, in) conv weight with the trailing 1x1 squeezed.  Torch builds
    _w = permute(w, [2,3,1,0]).reshape(-1, out) which for a 1x1 conv is w2.T.
    Returns w2 / sigma.
    """
    _w = w2.T                                   # (in, out)
    rows, cols = _w.shape
    left = rows <= cols
    norm_dim = 0 if left else 1
    u_shape = (rows, 1) if left else (1, cols)
    u = jax.random.normal(key, u_shape, dtype=w2.dtype)
    u = _l2_normalize(u, norm_dim)
    for _ in range(power_iterations):
        if left:
            v = _l2_normalize(_w.T @ u, 0)
            u = _l2_normalize(_w @ v, 0)
        else:
            v = _l2_normalize(u @ _w.T, 1)
            u = _l2_normalize(v @ _w, 1)
    sigma = (u.T @ _w) @ v if left else (v @ _w) @ u.T
    return w2 / sigma[0, 0]


def _round_up(x, m):
    return (x + m - 1) // m * m


# --------------------------------- Pallas kernel -----------------------------------

def _make_kernel(C, N, C8p, C2p, TQ, exp_in_bf16):
    N4 = N // 4

    def kernel(xp_ref, w_all_ref, wo_ref, gamma_ref, o_ref,
               theta_s, phi_s, g_s):
        q = pl.program_id(1)

        # ---- once per batch: fused theta|phi|g projection of the full (C, N)
        # slab + 2x2 max-pool of phi/g, kept resident in VMEM scratch ----------
        @pl.when(q == 0)
        def _():
            xbf = xp_ref[0].astype(jnp.bfloat16)                     # (C, N)
            proj = jnp.dot(w_all_ref[...], xbf,
                           preferred_element_type=jnp.float32)       # (2*C8p+C2p, N)
            theta_s[...] = proj[:C8p].astype(jnp.bfloat16)           # queries (no pool)
            phi_full = proj[C8p:2 * C8p]                             # (C8p, N)
            g_full = proj[2 * C8p:]                                  # (C2p, N)
            # 2x2 max-pool == max over the 4 window-position lane groups
            # (wrapper grouped layout: lanes [k*N4,(k+1)*N4) = window-position k).
            phi_p = phi_full[:, 0:N4]
            g_p = g_full[:, 0:N4]
            for k in range(1, 4):
                phi_p = jnp.maximum(phi_p, phi_full[:, k * N4:(k + 1) * N4])
                g_p = jnp.maximum(g_p, g_full[:, k * N4:(k + 1) * N4])
            phi_s[...] = phi_p.astype(jnp.bfloat16)                  # (C8p, N4)
            g_s[...] = g_p.astype(jnp.bfloat16)                      # (C2p, N4)

        # ---- per query tile: (N4 keys, TQ queries) flipped, lane-dense softmax --
        start = pl.multiple_of(q * TQ, TQ)
        th_t = theta_s[:, pl.ds(start, TQ)]                          # (C8p, TQ) bf16
        logits_t = lax.dot_general(
            phi_s[...], th_t, (((0,), (0,)), ((), ())),
            preferred_element_type=jnp.float32)                      # (N4, TQ) f32

        m = jnp.max(logits_t, axis=0, keepdims=True)                 # (1, TQ)
        z = logits_t - m
        if exp_in_bf16:
            e = jnp.exp(z.astype(jnp.bfloat16))                      # bf16 EUP (v6e/v7x)
        else:
            e = jnp.exp(z)                                           # f32 (v5e: no bf16 EUP)
        # f32 accumulator for the row-sum (required when e is bf16).
        s = jnp.sum(e, axis=0, keepdims=True, dtype=jnp.float32)     # (1, TQ)

        # Deferred normalization: value matmul on unnormalized exp weights, then
        # rescale attn_g (C2p x TQ multiplies, cheapest placement) with an EUP
        # approximate reciprocal.
        attn_g = lax.dot_general(
            g_s[...], e.astype(jnp.bfloat16), (((1,), (0,)), ((), ())),
            preferred_element_type=jnp.float32)                      # (C2p, TQ)
        attn_g = attn_g * pl.reciprocal(s, approx=True)

        # o_conv (1x1) -> (C, TQ), then gamma * out + x residual (f32).
        out = jnp.dot(wo_ref[...], attn_g.astype(jnp.bfloat16),
                      preferred_element_type=jnp.float32)            # (C, TQ)
        x_t = xp_ref[0, :, pl.ds(start, TQ)]                         # (C, TQ) f32
        o_ref[0] = gamma_ref[0] * out + x_t

    return kernel


def self_attention_forward(x, wt, wp, wg, wo, gamma, *, tq=512):
    """x: (B, C, W, H) float32 (NCHW, same as the PyTorch module)."""
    B, C, W, H = x.shape
    assert W % 2 == 0 and H % 2 == 0
    N = W * H
    N4 = N // 4
    C8, C2 = wt.shape[0], wg.shape[0]
    # Sublane-aligned projection segments (no-op when C8/C2 already multiples of 8).
    C8p = _round_up(C8, 8)
    C2p = _round_up(C2, 8)

    # Query-tile size: TQ ~ 512 at production sizes, shrunk to divide N.
    TQ = min(tq, N)
    while N % TQ != 0:
        TQ //= 2

    # Group pixels by their position inside each 2x2 pooling window so x is
    # shipped to the kernel exactly once:
    #   column k*N4 + m  <->  window-position k of pooling window m
    #   (m enumerated row-major over (W//2, H//2), matching the pooled reshape).
    xp = x.reshape(B, C, W // 2, 2, H // 2, 2)
    xp = jnp.transpose(xp, (0, 1, 3, 5, 2, 4)).reshape(B, C, N)
    xp = xp.astype(jnp.float32)

    # Fused projection weights (theta | phi | g), each segment zero-padded to an
    # 8-row boundary; wo's input dim padded to match the padded g segment.
    pad_rows = lambda w_, t: jnp.pad(w_, ((0, t - w_.shape[0]), (0, 0)))
    w_all = jnp.concatenate(
        [pad_rows(wt, C8p), pad_rows(wp, C8p), pad_rows(wg, C2p)],
        axis=0).astype(jnp.bfloat16)                                  # (2*C8p+C2p, C)
    wo_p = jnp.pad(wo, ((0, 0), (0, C2p - C2))).astype(jnp.bfloat16)  # (C, C2p)
    gamma = jnp.asarray(gamma, jnp.float32).reshape(1)

    # bf16 exp only where the EUP has a bf16 path (v6e / v7x); f32 otherwise.
    try:
        kind = jax.devices()[0].device_kind.lower()
        exp_in_bf16 = not any(t in kind for t in ("v2", "v3", "v4", "v5"))
    except Exception:  # pragma: no cover - conservative default
        exp_in_bf16 = True

    kernel = _make_kernel(C, N, C8p, C2p, TQ, exp_in_bf16)
    out_perm = pl.pallas_call(
        kernel,
        out_shape=jax.ShapeDtypeStruct((B, C, N), jnp.float32),
        grid=(B, N // TQ),
        in_specs=[
            # Full per-batch slab; index constant in q -> DMA'd once per batch.
            pl.BlockSpec((1, C, N), lambda b, q: (b, 0, 0)),
            pl.BlockSpec((2 * C8p + C2p, C), lambda b, q: (0, 0)),
            pl.BlockSpec((C, C2p), lambda b, q: (0, 0)),
            pl.BlockSpec(memory_space=pltpu.MemorySpace.SMEM),
        ],
        out_specs=pl.BlockSpec((1, C, TQ), lambda b, q: (b, 0, q)),
        scratch_shapes=[
            pltpu.VMEM((C8p, N), jnp.bfloat16),    # theta (full, per batch)
            pltpu.VMEM((C8p, N4), jnp.bfloat16),   # pooled phi
            pltpu.VMEM((C2p, N4), jnp.bfloat16),   # pooled g
        ],
        # Grouped xp buffer doubles as the output buffer (same shape/dtype, and
        # every lane of xp is consumed before its output tile is written back).
        input_output_aliases={0: 0},
        compiler_params=pltpu.CompilerParams(
            dimension_semantics=("parallel", "arbitrary"),
            vmem_limit_bytes=64 * 1024 * 1024),
    )(xp, w_all, wo_p, gamma)

    # Un-permute the window-grouped output back to NCHW (cheap XLA transpose).
    # TODO(synk): in a full network, keep the grouped layout canonical between
    # layers to drop this transpose and the one on the way in.
    out = out_perm.reshape(B, C, 2, 2, W // 2, H // 2)
    out = jnp.transpose(out, (0, 1, 4, 2, 5, 3)).reshape(B, C, W, H)
    return out


# ------------------------------ plain-JAX reference --------------------------------

def reference_forward(x, wt, wp, wg, wo, gamma):
    B, C, W, H = x.shape
    N = W * H
    xf = x.reshape(B, C, N)
    theta = jnp.einsum('oc,bcn->bon', wt, xf)
    phi = jnp.einsum('oc,bcn->bon', wp, xf).reshape(B, -1, W, H)
    g = jnp.einsum('oc,bcn->bon', wg, xf).reshape(B, -1, W, H)

    def pool(t):
        return t.reshape(t.shape[0], t.shape[1], W // 2, 2, H // 2, 2).max(axis=(3, 5))

    phi_p = pool(phi).reshape(B, -1, N // 4)
    g_p = pool(g).reshape(B, -1, N // 4)
    attn = jax.nn.softmax(jnp.einsum('bon,bom->bnm', theta, phi_p), axis=-1)
    attn_g = jnp.einsum('bom,bnm->bon', g_p, attn)
    out = jnp.einsum('co,bon->bcn', wo, attn_g)
    return (jnp.asarray(gamma).reshape(1, 1, 1) * out + xf).reshape(B, C, W, H)


# --------------------------------------- main ---------------------------------------

if __name__ == "__main__":
    B, C, W, H = 2, 32, 16, 16        # in_dim = 32 (must be divisible by 8)
    key = jax.random.PRNGKey(0)
    kx, kt, kp, kg, ko, kut, kup, kug, kuo = jax.random.split(key, 9)

    x = jax.random.normal(kx, (B, C, W, H), dtype=jnp.float32)

    # Conv weights (out, in) for the 1x1 convolutions, deterministic init.
    w_theta = 0.1 * jax.random.normal(kt, (C // 8, C), dtype=jnp.float32)
    w_phi = 0.1 * jax.random.normal(kp, (C // 8, C), dtype=jnp.float32)
    w_g = 0.1 * jax.random.normal(kg, (C // 2, C), dtype=jnp.float32)
    w_o = 0.1 * jax.random.normal(ko, (C, C // 2), dtype=jnp.float32)

    # SpectralNorm wrapping (2 power iterations), as done on every forward call.
    w_theta = spectral_norm_1x1_conv(w_theta, kut)
    w_phi = spectral_norm_1x1_conv(w_phi, kup)
    w_g = spectral_norm_1x1_conv(w_g, kug)
    w_o = spectral_norm_1x1_conv(w_o, kuo)

    gamma = jnp.zeros((1,), dtype=jnp.float32)   # module init: Parameter(torch.zeros(1))

    # tq=128 at this toy size so the query-tiling path (grid=(B, 2), pl.when(q==0))
    # is exercised; production sizes use the default tq=512.
    # Module-faithful run (gamma == 0  ->  output == x, bit-exact since x and the
    # residual stay f32).
    y = self_attention_forward(x, w_theta, w_phi, w_g, w_o, gamma, tq=128)
    jax.block_until_ready(y)
    assert np.all(np.isfinite(np.asarray(y)))
    assert np.allclose(np.asarray(y), np.asarray(x), atol=1e-5)

    # Extra functional check of the attention path with a nonzero gamma.
    # The kernel uses bf16 MXU operands (f32 accumulation) and a bf16 exp on
    # v6e/v7x, so compare against the pure-f32 reference with a tolerance that
    # still catches structural bugs.
    g1 = jnp.ones((1,), dtype=jnp.float32)
    y1 = self_attention_forward(x, w_theta, w_phi, w_g, w_o, g1, tq=128)
    yr = reference_forward(x, w_theta, w_phi, w_g, w_o, g1)
    jax.block_until_ready(y1)
    a, b = np.asarray(y1), np.asarray(yr)
    rel_err = np.linalg.norm(a - b) / (np.linalg.norm(b) + 1e-12)
    assert np.all(np.isfinite(a)) and rel_err < 5e-2, f"rel_err={rel_err}"

    print("KERNEL_OK")
</pallas_src>

<mosaic_0001>
module attributes {stable_mosaic.version = 11 : i64} {
  func.func @kernel(%arg0: i32, %arg1: i32, %arg2: memref<1x32x256xf32, #tpu.memory_space<vmem>>, %arg3: memref<32x32xbf16, #tpu.memory_space<vmem>>, %arg4: memref<32x16xbf16, #tpu.memory_space<vmem>>, %arg5: memref<1xf32, #tpu.memory_space<smem>>, %arg6: memref<1x32x128xf32, #tpu.memory_space<vmem>>, %arg7: memref<8x256xbf16, #tpu.memory_space<vmem>>, %arg8: memref<8x64xbf16, #tpu.memory_space<vmem>>, %arg9: memref<16x64xbf16, #tpu.memory_space<vmem>>) attributes {dimension_semantics = [#tpu.dimension_semantics<parallel>, #tpu.dimension_semantics<arbitrary>], iteration_bounds = array<i64: 2, 2>, scalar_prefetch = 0 : i64, scratch_operands = 3 : i64, tpu.core_type = #tpu.core_type<tc>, window_params = [{transform_indices = @transform_0, window_bounds = array<i64: 1, 32, 256>}, {pipeline_mode = #tpu.pipeline_mode<synchronous>, transform_indices = @transform_1, window_bounds = array<i64: 32, 32>}, {pipeline_mode = #tpu.pipeline_mode<synchronous>, transform_indices = @transform_2, window_bounds = array<i64: 32, 16>}, {transform_indices = @transform_3, window_bounds = array<i64: 1>}, {transform_indices = @transform_4, window_bounds = array<i64: 1, 32, 128>}]} {
    %c0_i32 = arith.constant 0 : i32
    %0 = arith.cmpi eq, %arg1, %c0_i32 : i32
    %1 = arith.extui %0 : i1 to i32
    %c0_i32_0 = arith.constant 0 : i32
    %2 = arith.cmpi ne, %1, %c0_i32_0 : i32
    scf.if %2 {
      %c0_17 = arith.constant 0 : index
      %c0_18 = arith.constant 0 : index
      %c0_19 = arith.constant 0 : index
      %36 = vector.load %arg2[%c0_17, %c0_18, %c0_19] : memref<1x32x256xf32, #tpu.memory_space<vmem>>, vector<1x32x256xf32>
      %37 = vector.shape_cast %36 : vector<1x32x256xf32> to vector<32x256xf32>
      %38 = arith.truncf %37 : vector<32x256xf32> to vector<32x256xbf16>
      %c0_20 = arith.constant 0 : index
      %c0_21 = arith.constant 0 : index
      %39 = vector.load %arg3[%c0_20, %c0_21] : memref<32x32xbf16, #tpu.memory_space<vmem>>, vector<32x32xbf16>
      %cst_22 = arith.constant dense<0.000000e+00> : vector<32x256xf32>
      %40 = tpu.matmul %39, %38, %cst_22 {dimension_numbers = #tpu.dot_dimension_numbers<[1], [0], [0], [1], [0, 0, 1, 1], [], []>} : vector<32x32xbf16>, vector<32x256xbf16>, vector<32x256xf32> -> vector<32x256xf32>
      %41 = vector.extract_strided_slice %40 {offsets = [0, 0], sizes = [8, 256], strides = [1, 1]} : vector<32x256xf32> to vector<8x256xf32>
      %42 = arith.truncf %41 : vector<8x256xf32> to vector<8x256xbf16>
      %c0_23 = arith.constant 0 : index
      %c0_24 = arith.constant 0 : index
      %43 = vector.load %arg7[%c0_23, %c0_24] : memref<8x256xbf16, #tpu.memory_space<vmem>>, vector<8x256xbf16>
      tpu.vector_store %arg7[%c0_23, %c0_24], %42 {strides = array<i32>} : memref<8x256xbf16, #tpu.memory_space<vmem>>, vector<8x256xbf16>,
      %44 = vector.extract_strided_slice %40 {offsets = [8, 0], sizes = [8, 256], strides = [1, 1]} : vector<32x256xf32> to vector<8x256xf32>
      %45 = vector.extract_strided_slice %40 {offsets = [16, 0], sizes = [16, 256], strides = [1, 1]} : vector<32x256xf32> to vector<16x256xf32>
      %46 = vector.extract_strided_slice %44 {offsets = [0, 0], sizes = [8, 64], strides = [1, 1]} : vector<8x256xf32> to vector<8x64xf32>
      %47 = vector.extract_strided_slice %45 {offsets = [0, 0], sizes = [16, 64], strides = [1, 1]} : vector<16x256xf32> to vector<16x64xf32>
      %48 = vector.extract_strided_slice %44 {offsets = [0, 64], sizes = [8, 64], strides = [1, 1]} : vector<8x256xf32> to vector<8x64xf32>
      %49 = arith.maximumf %46, %48 : vector<8x64xf32>
      %50 = vector.extract_strided_slice %45 {offsets = [0, 64], sizes = [16, 64], strides = [1, 1]} : vector<16x256xf32> to vector<16x64xf32>
      %51 = arith.maximumf %47, %50 : vector<16x64xf32>
      %52 = vector.extract_strided_slice %44 {offsets = [0, 128], sizes = [8, 64], strides = [1, 1]} : vector<8x256xf32> to vector<8x64xf32>
      %53 = arith.maximumf %49, %52 : vector<8x64xf32>
      %54 = vector.extract_strided_slice %45 {offsets = [0, 128], sizes = [16, 64], strides = [1, 1]} : vector<16x256xf32> to vector<16x64xf32>
      %55 = arith.maximumf %51, %54 : vector<16x64xf32>
      %56 = vector.extract_strided_slice %44 {offsets = [0, 192], sizes = [8, 64], strides = [1, 1]} : vector<8x256xf32> to vector<8x64xf32>
      %57 = arith.maximumf %53, %56 : vector<8x64xf32>
      %58 = vector.extract_strided_slice %45 {offsets = [0, 192], sizes = [16, 64], strides = [1, 1]} : vector<16x256xf32> to vector<16x64xf32>
      %59 = arith.maximumf %55, %58 : vector<16x64xf32>
      %60 = arith.truncf %57 : vector<8x64xf32> to vector<8x64xbf16>
      %c0_25 = arith.constant 0 : index
      %c0_26 = arith.constant 0 : index
      %61 = vector.load %arg8[%c0_25, %c0_26] : memref<8x64xbf16, #tpu.memory_space<vmem>>, vector<8x64xbf16>
      tpu.vector_store %arg8[%c0_25, %c0_26], %60 {strides = array<i32>} : memref<8x64xbf16, #tpu.memory_space<vmem>>, vector<8x64xbf16>,
      %62 = arith.truncf %59 : vector<16x64xf32> to vector<16x64xbf16>
      %c0_27 = arith.constant 0 : index
      %c0_28 = arith.constant 0 : index
      %63 = vector.load %arg9[%c0_27, %c0_28] : memref<16x64xbf16, #tpu.memory_space<vmem>>, vector<16x64xbf16>
      tpu.vector_store %arg9[%c0_27, %c0_28], %62 {strides = array<i32>} : memref<16x64xbf16, #tpu.memory_space<vmem>>, vector<16x64xbf16>,
    } else {
    }
    %c128_i32 = arith.constant 128 : i32
    %3 = arith.muli %arg1, %c128_i32 : i32
    %4 = tpu.assume_multiple %3, 128 : i32
    %c0 = arith.constant 0 : index
    %5 = arith.index_cast %4 : i32 to index
    %6 = vector.load %arg7[%c0, %5] : memref<8x256xbf16, #tpu.memory_space<vmem>>, vector<8x128xbf16>
    %c0_1 = arith.constant 0 : index
    %c0_2 = arith.constant 0 : index
    %7 = vector.load %arg8[%c0_1, %c0_2] : memref<8x64xbf16, #tpu.memory_space<vmem>>, vector<8x64xbf16>
    %cst = arith.constant dense<0.000000e+00> : vector<64x128xf32>
    %8 = tpu.matmul %7, %6, %cst {dimension_numbers = #tpu.dot_dimension_numbers<[0], [0], [1], [1], [0, 1, 1, 1], [], []>} : vector<8x64xbf16>, vector<8x128xbf16>, vector<64x128xf32> -> vector<64x128xf32>
    %cst_3 = arith.constant dense<0xFF800000> : vector<128xf32>
    %9 = vector.multi_reduction <maximumf>, %8, %cst_3 [0] : vector<64x128xf32> to vector<128xf32>
    %10 = vector.shape_cast %9 : vector<128xf32> to vector<1x128xf32>
    %11 = vector.broadcast %10 : vector<1x128xf32> to vector<64x128xf32>
    %12 = arith.subf %8, %11 : vector<64x128xf32>
    %13 = arith.truncf %12 : vector<64x128xf32> to vector<64x128xbf16>
    %14 = math.exp %13 : vector<64x128xbf16>
    %15 = arith.extf %14 : vector<64x128xbf16> to vector<64x128xf32>
    %cst_4 = arith.constant dense<0.000000e+00> : vector<128xf32>
    %16 = vector.multi_reduction <add>, %15, %cst_4 [0] : vector<64x128xf32> to vector<128xf32>
    %17 = vector.shape_cast %16 : vector<128xf32> to vector<1x128xf32>
    %c0_5 = arith.constant 0 : index
    %c0_6 = arith.constant 0 : index
    %18 = vector.load %arg9[%c0_5, %c0_6] : memref<16x64xbf16, #tpu.memory_space<vmem>>, vector<16x64xbf16>
    %cst_7 = arith.constant dense<0.000000e+00> : vector<16x128xf32>
    %19 = tpu.matmul %18, %14, %cst_7 {dimension_numbers = #tpu.dot_dimension_numbers<[1], [0], [0], [1], [0, 0, 1, 1], [], []>} : vector<16x64xbf16>, vector<64x128xbf16>, vector<16x128xf32> -> vector<16x128xf32>
    %20 = tpu.reciprocal %17 {approx = true} : vector<1x128xf32> -> vector<1x128xf32>
    %21 = vector.broadcast %20 : vector<1x128xf32> to vector<16x128xf32>
    %22 = arith.mulf %19, %21 : vector<16x128xf32>
    %c0_8 = arith.constant 0 : index
    %c0_9 = arith.constant 0 : index
    %23 = vector.load %arg4[%c0_8, %c0_9] : memref<32x16xbf16, #tpu.memory_space<vmem>>, vector<32x16xbf16>
    %24 = arith.truncf %22 : vector<16x128xf32> to vector<16x128xbf16>
    %cst_10 = arith.constant dense<0.000000e+00> : vector<32x128xf32>
    %25 = tpu.matmul %23, %24, %cst_10 {dimension_numbers = #tpu.dot_dimension_numbers<[1], [0], [0], [1], [0, 0, 1, 1], [], []>} : vector<32x16xbf16>, vector<16x128xbf16>, vector<32x128xf32> -> vector<32x128xf32>
    %c0_11 = arith.constant 0 : index
    %c0_12 = arith.constant 0 : index
    %26 = arith.index_cast %4 : i32 to index
    %27 = vector.load %arg2[%c0_11, %c0_12, %26] : memref<1x32x256xf32, #tpu.memory_space<vmem>>, vector<1x32x128xf32>
    %28 = vector.shape_cast %27 : vector<1x32x128xf32> to vector<32x128xf32>
    %c0_13 = arith.constant 0 : index
    %29 = memref.load %arg5[%c0_13] : memref<1xf32, #tpu.memory_space<smem>>
    %30 = vector.broadcast %29 : f32 to vector<32x128xf32>
    %31 = arith.mulf %30, %25 : vector<32x128xf32>
    %32 = arith.addf %31, %28 : vector<32x128xf32>
    %c0_14 = arith.constant 0 : index
    %c0_15 = arith.constant 0 : index
    %c0_16 = arith.constant 0 : index
    %33 = vector.load %arg6[%c0_14, %c0_15, %c0_16] : memref<1x32x128xf32, #tpu.memory_space<vmem>>, vector<1x32x128xf32>
    %34 = vector.shape_cast %33 : vector<1x32x128xf32> to vector<32x128xf32>
    %35 = vector.shape_cast %32 : vector<32x128xf32> to vector<1x32x128xf32>
    tpu.vector_store %arg6[%c0_14, %c0_15, %c0_16], %35 {strides = array<i32>} : memref<1x32x128xf32, #tpu.memory_space<vmem>>, vector<1x32x128xf32>,
    return
  }
  func.func @transform_0(%arg0: i32, %arg1: i32) -> (i32, i32, i32) {
    %c0_i32 = arith.constant 0 : i32
    %c0_i32_0 = arith.constant 0 : i32
    %c0_i32_1 = arith.constant 0 : i32
    return %arg0, %c0_i32, %c0_i32_0 : i32, i32, i32
  }
  func.func @transform_1(%arg0: i32, %arg1: i32) -> (i32, i32) {
    %c0_i32 = arith.constant 0 : i32
    %c0_i32_0 = arith.constant 0 : i32
    %c0_i32_1 = arith.constant 0 : i32
    return %c0_i32, %c0_i32_0 : i32, i32
  }
  func.func @transform_2(%arg0: i32, %arg1: i32) -> (i32, i32) {
    %c0_i32 = arith.constant 0 : i32
    %c0_i32_0 = arith.constant 0 : i32
    %c0_i32_1 = arith.constant 0 : i32
    return %c0_i32, %c0_i32_0 : i32, i32
  }
  func.func @transform_3(%arg0: i32, %arg1: i32) -> i32 {
    %c0_i32 = arith.constant 0 : i32
    %c0_i32_0 = arith.constant 0 : i32
    return %c0_i32 : i32
  }
  func.func @transform_4(%arg0: i32, %arg1: i32) -> (i32, i32, i32) {
    %c0_i32 = arith.constant 0 : i32
    %c0_i32_0 = arith.constant 0 : i32
    return %arg0, %c0_i32, %arg1 : i32, i32, i32
  }
}

</mosaic_0001>

<bundles_post_ra>
// kernel: tpu_custom_call.1
= control target key start
LH: loop header
LB: loop body
LE: loop exit
PB: predicated region body
PF: predicated region fallthrough
CT: control target
= control target key end

     0   :  { %s1443_s0 = inlined_call_operand.hbm [shape: f32[2,32,256], index: 0, kind: input, shape index: {}, may-alias: {0,4}]   ;;  %s1444_s1 = inlined_call_operand.vmem [shape: bf16[32,32], index: 1, kind: input, shape index: {}]   ;;  %s1445_s2 = inlined_call_operand.vmem [shape: bf16[32,16], index: 2, kind: input, shape index: {}]   ;;  %s1446_s3 = inlined_call_operand.<no memory space> [shape: f32[1], index: 3, kind: input, shape index: {}]   ;;  %s1447_s4 = inlined_call_operand.hbm [shape: f32[2,32,256], index: 4, kind: output, shape index: {}, may-alias: {0,4}]  }
   0x1   :  { %9 = sst [smem:[#allocation5]] %s1446_s3 }
   0x2   :  { %10 = vsyncpa [#allocation7], 0 }
   0x3   :  { %12 = vsyncpa [#allocation7 + $0x1], 0 }
   0x4   :  { %13 = vsyncpa [#allocation8], 0 }
   0x5   :  { %15 = vsyncpa [#allocation8 + $0x1], 0  ;;  %s1208_s17 = smov 0   ;;  %s1210_s18 = smov 0  }
   0x6   :  { %s1212_s19 = smov 0   ;;  %s1214_s20 = smov 0  }
   0x7   :  { %s1216_s21 = smov 0   ;;  %s1218_s22 = smov 0  }
   0x8   :  { %s1220_s23 = smov 0   ;;  %s1222_s24 = smov 0  }
   0x9   :  { %s1224_s3 = smov 0   ;;  %s1226_s25 = smov 0  }
   0xa   :  { %s1228_s26 = smov 0  }
   0xb LB: > { %1451 = sst [smem:[#allocation12_spill]] %s1163_s25  ;;  %s791_s27 = sadd.s32 4294967295, %s1167_s26   ;;  %s1167_s26 = sphi %s1228_s26, %s21_s26   ;;  %s1163_s25 = sphi %s1226_s25, %s1461_s25   ;;  %s1159_s3 = sphi %s1224_s3, %s1469_s3   ;;  %s1155_s24 = sphi %s1222_s24, %s1459_s24   ;;  %s1151_s23 = sphi %s1220_s23, %s1468_s23   ;;  %s1147_s22 = sphi %s1218_s22, %s1467_s22   ;;  %s1143_s21 = sphi %s1216_s21, %s1466_s21   ;;  %s1139_s20 = sphi %s1214_s20, %s1465_s20   ;;  %s1135_s19 = sphi %s1212_s19, %s1464_s19   ;;  %s1131_s18 = sphi %s1210_s18, %s1463_s18   ;;  %s1127_s17 = sphi %s1208_s17, %s1462_s17  }
   0xc   : > { %s792_s28 = sadd.s32 4294967294, %s1167_s26   ;;  %s30_s29 = sadd.s32 1, %s1159_s3 }
   0xd   : > { %s33_s30 = sadd.s32 1, %s1163_s25  ;;  %p31_p0 = scmp.ge.s32.totalorder %s30_s29, 2 }
   0xe   : > { %s40_s5 = sadd.s32 1, %s1147_s22  ;;  %p47_p1 = scmp.ne.s32.totalorder %s1147_s22, %s1143_s21 }
   0xf   : > { %p48_p2 = scmp.eq.s32.totalorder %s1167_s26, 0  ;;  %s1471_s29 = smov (%p31_p0, %s30_s29), 0 }
  0x10   : > { %1452 = sst [smem:[#allocation13_spill]] %s1471_s29  ;;  %s1473_s30 = smov (!%p31_p0, %s33_s30), %s1163_s25 }
  0x11   : > { %p1272_p3 = por %p48_p2, %p47_p1  ;;  %p53_p4 = scmp.ne.s32.totalorder %s1143_s21, %s1139_s20 }
  0x12   : > { %p35_p5 = scmp.ge.s32.totalorder %s1473_s30, 2  ;;  %p54_p6 = scmp.eq.s32.totalorder %s791_s27, 0 }
  0x13   : > { %s127_s7 = ssub.s32 %s1159_s3, %s1471_s29  ;;  %s131_s8 = sadd.s32 1, %s1135_s19 }
  0x14   : > { %s1475_s30 = smov (%p35_p5, %s1473_s30), 0  ;;  %p1282_p7 = por %p54_p6, %p53_p4 }
  0x15   : > { %1454 = sst [smem:[#allocation14_spill]] %s1475_s30  ;;  %p141_p8 = scmp.ne.s32.totalorder %s1135_s19, %s1131_s18 }
  0x16   : > { %s37_s10 = ssub.s32 %s1163_s25, %s1475_s30  ;;  %p142_p9 = scmp.eq.s32.totalorder %s791_s27, 3 }
  0x17   : > { %p38_p10 = scmp.eq.s32.totalorder %s37_s10, 0  ;;  %s128_s11 = sor.u32 %s127_s7, %s37_s10 }
  0x18   : > { %p129_p11 = scmp.eq.s32.totalorder %s128_s11, 0  ;;  %p1290_p12 = por %p142_p9, %p141_p8 }
  0x19   : > { %s1295_s13 = scalar_select %p38_p10, %s1147_s22, %s40_s5  }
  0x1a   : > { %s1298_s14 = scalar_select %p129_p11, %s1135_s19, %s131_s8  }
  0x1b   : > { %p147_p13 = scmp.ne.s32.totalorder %s1131_s18, %s1127_s17  ;;  %p148_p0 = scmp.eq.s32.totalorder %s792_s28, 3 }
  0x1c   : > { %p889_p1 = scmp.lt.s32.totalorder %s1167_s26, 4  ;;  %s177_s16 = sand.u32 1, %s1147_s22  }
  0x1d   : > { %p1303_p2 = por %p148_p0, %p147_p13  ;;  %s795_s20 = sshll.u32 %s177_s16, 6 }
  0x1e   : > { %s827_s27 = sshll.u32 %s1163_s25, 10  ;;  %s181_s30 = scalar_lea.vmem [#allocation6], %s795_s20 }
  0x1f   : > { %s187_s11 = scalar_lea.hbm %s1443_s0, %s827_s27  ;;  %s188_s29 = sshll.u32 %s181_s30, 4  ;;  %s189_s29 = int_to_ptr.vmem [resolvable:$true] %s188_s29 }
  0x20   : > { %p1314_p4 = pnand %p889_p1, %p1272_p3  ;;  %p798_p5 = scmp.ge.s32.totalorder %s1167_s26, 1 }
  0x21   : > { %s178_s28 = scalar_lea.sflag [#allocation7], %s177_s16  ;;  %s1032_s8 = scalar_lea.vmem %s189_s29, 1024 }
  0x22   : > { %p1021_p6 = pneg %p1314_p4  ;;  %p1033_p8 = scmp.ne.s32.totalorder %s189_s29, %s1032_s8 }
  0x23   : > { %s1169_s25 = smov [#allocation6]  }
  0x24   : > { %p1035_p9 = pnand %p1033_p8, %p1021_p6  ;;  %s1037_s7 = sshll.u32 %s1169_s25, 4  ;;  %s1038_s7 = int_to_ptr.vmem [resolvable:$false] %s1037_s7 }
  0x25   : > { %s1039_s20 = scalar_lea.vmem %s1038_s7, 2048  ;;  %p1040_p11 = scmp.lt.s32.totalorder %s189_s29, %s1038_s7 }
  0x26   : > { %p1036_p10 = pneg %p1035_p9  ;;  %p1041_p13 = scmp.lt.s32.totalorder %s1039_s20, %s1032_s8 }
  0x28   : > { %p1042_p0 = por %p1041_p13, %p1040_p11 }
  0x2a   : > { %p1043_p3 = pnand %p1042_p0, %p1036_p10 }
  0x2c   : > { %1046 = shalt.err (!%p1043_p3)
}
  0x2d   : > { %s1170_s30 = smov 256   ;;  %s1171_s6 = smov 16  }
  0x2e   : > { %884 = dma.hbm_to_vmem [thread:$0]  (!%p1314_p4), %s187_s11, 1024, %s189_s29, %s178_s28, %s1170_s30, %s1170_s30, %s1171_s6  }
  0x2f   : > { %p196_p1 = scmp.lt.s32.totalorder %s1167_s26, 5 }
  0x31   : > { %p197_p6 = pnand %p798_p5, %p196_p1 }
  0x32   : > { %s202_s25 = sand.u32 (!%p197_p6), 1, %s1143_s21  }
  0x33   : > { %200 = sbr.rel (%p197_p6) target bundleno = 1194 (0x4aa), region = 36  ;;  %s799_s16 = sshll.u32 (!%p197_p6), %s202_s25, 6 }
  0x34   : > { %s203_s27 = scalar_lea.sflag (!%p197_p6), [#allocation7], %s202_s25  ;;  %s1327_s10 = scalar_lea.vmem (!%p197_p6), [#allocation6], %s799_s16 }
  0x38   : > { %1118 = dma.done.wait (%p1282_p7), %s203_s27, 1024  }
  0x39   : > { %1120 = vsyncadd (%p1282_p7), %s203_s27, 4294966272  ;;  %s228_s5 = sand.u32 1, %s1131_s18   ;;  %p801_p4 = scmp.ne.s32.totalorder %s1151_s23, 0 }
  0x3a   : > { %s800_s29 = sshll.u32 %s228_s5, 5  ;;  %s1173_s20 = smov (!%p801_p4), 64  }
  0x3b   : > { %s1336_s11 = scalar_lea.vmem [#allocation9], %s800_s29  ;;  %235 = sbr.rel (%p801_p4) target bundleno = 404 (0x194), region = 44 }
  0x40   : > { %v241_v0 = vld [vmem:[%s1327_s10 + $0x28] sm:$0xff]  ;;  %v243_v1 = vld [vmem:[%s1327_s10 + $0x38] sm:$0xff]  ;;  %v240_v2 = vld [vmem:[%s1327_s10 + $0x20] sm:$0xff]  ;;  %v1172_v7 = vmov 0   ;;  %vm262_vm0 = vcmask 261120   ;;  %vm365_vm1 = vcmask 519168  }
  0x41   : > { %v247_v3 = vpack.c.bf16 %v243_v1, %v241_v0  ;;  %v242_v4 = vld [vmem:[%s1327_s10 + $0x30] sm:$0xff]  ;;  %v237_v5 = vld [vmem:[%s1327_s10 + $0x8] sm:$0xff]  ;;  %v239_v6 = vld [vmem:[%s1327_s10 + $0x18] sm:$0xff]  ;;  %301 = vmatprep.mubr.bf16.mxu0 %v1172_v7  ;;  %311 = vmatprep.mubr.bf16.mxu1 %v1172_v7 }
  0x42   : > { %v246_v8 = vpack.c.bf16 %v242_v4, %v240_v2  ;;  %v245_v9 = vpack.c.bf16 %v239_v6, %v237_v5  ;;  %v236_v10 = vld [vmem:[%s1327_s10] sm:$0xff]  ;;  %v238_v11 = vld [vmem:[%s1327_s10 + $0x10] sm:$0xff] }
  0x43   : > { %281 = vmatprep.subr.bf16.mxu0 %v247_v3  ;;  %872 = vmatprep.subr.bf16.mxu1 %v247_v3  ;;  %v244_v12 = vpack.c.bf16 %v238_v11, %v236_v10  ;;  %v1004_v13 = vld [vmem:[%s1444_s1] sm:$0xff]   ;;  %v1005_v14 = vld [vmem:[%s1444_s1 + $0x8] sm:$0xff]  }
  0x44   : > { %282 = vmatpush1.bf16.msra.mxu0 %v246_v8  ;;  %874 = vmatpush1.bf16.msra.mxu1 %v246_v8 }
  0x45   : > { %283 = vmatprep.subr.bf16.mxu0 %v245_v9  ;;  %873 = vmatprep.subr.bf16.mxu1 %v245_v9 }
  0x48   : > { %284 = vmatpush1.bf16.msra.mxu0 %v244_v12  ;;  %875 = vmatpush1.bf16.msra.mxu1 %v244_v12 }
  0x4b   : > { %804 = vmatmul.mubr.msk.bf16.vlgmr.msra.gmra.mxu0 %vm262_vm0, %v1004_v13  ;;  %805 = vmatmul.mubr.msk.bf16.vlgmr.msra.gmra.mxu1 %vm262_vm0, %v1005_v14 }
 0x10b   : > { %v303_v15 = vpop.f32.mrf.mxu0  ;;  %v313_v16 = vpop.f32.mrf.mxu1 }
 0x10d   : > { %v305_v17 = vpop.f32.mrf.mxu0  ;;  %v315_v18 = vpop.f32.mrf.mxu1 }
 0x10e   : > { %v828_v19 = vpack.c.bf16 %v305_v17, %v303_v15 }
 0x10f   : > { %v307_v20 = vpop.f32.mrf.mxu0  ;;  %v317_v21 = vpop.f32.mrf.mxu1 }
 0x110   : > { %330 = vst [vmem:[#allocation2] sm:$0xff] %v828_v19  ;;  %v989_v22 = vpack.i.bf16 %v313_v16, %v307_v20 }
 0x111   : > { %v309_v23 = vpop.f32.mrf.mxu0  ;;  %v319_v24 = vpop.f32.mrf.mxu1 }
 0x112   : > { %v999_v25 = vpack.i.bf16 %v319_v24, %v315_v18  ;;  %990 = vrot.lane.b32.xlu0 %v989_v22, %s1173_s20  ;;  %v994_v26 = vpack.i.bf16 %v309_v23, %v317_v21 }
 0x114   : > { %1000 = vrot.lane.b32.xlu1 %v999_v25, %s1173_s20 }
 0x116   : > { %995 = vrot.lane.b32.xlu0 %v994_v26, %s1173_s20 }
 0x184   : > { %v991_v27 = vpop.permute.xlu0 %990 }
 0x185   : > { %v993_v28 = vunpack.i.h.bf16 %v991_v27  ;;  %v992_v29 = vunpack.i.l.bf16 %v991_v27 }
 0x186   : > { %v1001_v30 = vpop.permute.xlu1 %1000 }
 0x187   : > { %v344_v31 = vmax.f32 %v313_v16, %v993_v28  ;;  %v335_v32 = vmax.f32 %v307_v20, %v992_v29  ;;  %v1002_v33 = vunpack.i.l.bf16 %v1001_v30  ;;  %v1003_v42 = vunpack.i.h.bf16 %v1001_v30 }
 0x188   : > { %v996_v34 = vpop.permute.xlu0 %995 }
 0x189   : > { %v347_v35 = vmax.f32 %v344_v31, %v315_v18  ;;  %v998_v36 = vunpack.i.h.bf16 %v996_v34  ;;  %v997_v37 = vunpack.i.l.bf16 %v996_v34  ;;  %v346_v38 = vmax.f32 %v335_v32, %v309_v23 }
 0x18b   : > { %v362_v39 = vmax.f32 %v347_v35, %v1002_v33  ;;  %v345_v40 = vmax.f32 %v317_v21, %v997_v37  ;;  %v353_v41 = vmax.f32 %v346_v38, %v998_v36 }
 0x18d   : > { %v829_v43 = vpack.c.bf16 %v362_v39, %v362_v39  ;;  %v348_v44 = vmax.f32 %v345_v40, %v319_v24  ;;  %v364_v45 = vpack.c.bf16 %v353_v41, %v353_v41 }
 0x18f   : > { %375 = vst.msk [vmem:[#allocation4] sm:$0xf] %vm365_vm1, %v829_v43  ;;  %v363_v46 = vmax.f32 %v348_v44, %v1003_v42  ;;  %366 = vst.msk [vmem:[#allocation3] sm:$0xf] %vm365_vm1, %v364_v45 }
 0x191   : > { %v830_v47 = vpack.c.bf16 %v363_v46, %v363_v46 }
 0x193   : > { %376 = vst.msk [vmem:[#allocation4 + $0x4] sm:$0xf] %vm365_vm1, %v830_v47 }
 0x194 PF: > { %s809_s30 = sshll.u32 %s1151_s23, 7  ;;  %vm413_vm2 = vcmask 1043456   ;;  %vm400_vm3 = vcmask 64512   ;;  %v1174_v55 = vmov 0.0   ;;  %vm1175_vm4 = vmmov 0   ;;  %s672_s8 = sld [smem:[#allocation5]] }
 0x195   : > { %s1354_s6 = sshra.s32 %s809_s30, 7  ;;  %854 = vmatprep.subr.bf16.mxu1 %v1174_v55  ;;  %862 = vmatprep.mubr.msk.bf16.mxu1 %vm1175_vm4, %v1174_v55  ;;  %vm547_vm5 = vcmask 523264   ;;  %vm610_vm6 = vcmask 130048   ;;  %s823_s30 = sshll.u32 %s1155_s24, 3 }
 0x196   : > { %v383_v48 = vld [vmem:[#allocation3] sm:$0xf]  ;;  %s810_s25 = sshll.u32 %s1354_s6, 2  ;;  %s821_s7 = sshll.u32 %s1354_s6, 3 }
 0x197   : > { %384 = vxpose.xlu0.c.b16.start.end [1/1] (short) (narrow) %v383_v48, 64  ;;  %s381_s16 = scalar_lea.vmem [#allocation2], %s810_s25  ;;  %s667_s20 = scalar_lea.vmem %s1327_s10, %s821_s7 [#allocation6] }
 0x198   : > { %v382_v49 = vld [vmem:[%s381_s16] sm:$0xf]  ;;  %s698_s25 = sadd.s32 %s1151_s23, %s823_s30  ;;  %s701_s24 = sshll.u32 %s1336_s11, 4  ;;  %s1377_s24 = int_to_ptr.vmem [resolvable:$true] %s701_s24 }
 0x199   : > { %876 = vmatprep.subr.msk.bf16.mxu0 %vm413_vm2, %v382_v49  ;;  %v415_v50 = vsel %vm413_vm2, %v382_v49, 0  ;;  %v1007_v49 = vld [vmem:[%s1445_s2] sm:$0xff]   ;;  %s824_s16 = sshll.u32 %s698_s25, 7  ;;  %s1383_s27 = scalar_lea.sflag [#allocation8], %s228_s5 }
 0x19a   : > { %845 = vmatpush3.bf16.msra.mxu0 %v415_v50  ;;  %v1006_v43 = vld [vmem:[#allocation4] sm:$0xff]   ;;  %s1375_s6 = scalar_lea.hbm %s1447_s4, %s824_s16  ;;  %s1047_s29 = scalar_lea.vmem %s1377_s24, 512 }
 0x19b   : > { %p1048_p7 = scmp.ne.s32.totalorder %s1377_s24, %s1047_s29  ;;  %s1176_s9 = smov [#allocation9]  }
 0x19c   : > { %s1051_s28 = sshll.u32 %s1176_s9, 4  ;;  %s1052_s28 = int_to_ptr.vmem [resolvable:$false] %s1051_s28 }
 0x19d   : > { %p1049_p5 = pnand %p1048_p7, %p1290_p12  ;;  %p1054_p9 = scmp.lt.s32.totalorder %s1377_s24, %s1052_s28 }
 0x19f   : > { %p1050_p8 = pneg %p1049_p5 }
 0x1f9   : > { %v392_v51 = vpop.trf.xlu0 }
 0x1fa   : > { %846 = vmatprep.mubr.msk.bf16.mxu0 %vm400_vm3, %v392_v51 }
 0x1fd   : > { %v393_v52 = vpop.trf.xlu0 }
 0x1fe   : > { %847 = vmatmul.mubr.msk.bf16.vlgmr.msra.gmra.mxu0 %vm400_vm3, %v393_v52 }
 0x201   : > { %v394_v53 = vpop.trf.xlu0 }
 0x202   : > { %850 = vmatprep.mubr.msk.bf16.mxu0 %vm400_vm3, %v394_v53 }
 0x205   : > { %v395_v54 = vpop.trf.xlu0 }
 0x206   : > { %851 = vmatmul.mubr.msk.bf16.gmra.mxu0 %vm400_vm3, %v395_v54 }
 0x207   : > { %868 = vmatprep.mubr.msk.bf16.mxu0 %vm610_vm6, %v1007_v49 }
 0x2be   : > { %v848_v56 = vpop.f32.mrf.mxu0 }
 0x2c0   : > { %v451_v57 = vpop.f32.mrf.mxu0 }
 0x2c2   : > { %v849_v58 = vpop.f32.mrf.mxu0 }
 0x2c4   : > { %v454_v59 = vpop.f32.mrf.mxu0 }
 0x2c6   : > { %v852_v60 = vpop.f32.mrf.mxu0 }
 0x2c7   : > { %v484_v1 = vmax.f32 %v848_v56, %v852_v60 }
 0x2c8   : > { %v467_v61 = vpop.f32.mrf.mxu0 }
 0x2c9   : > { %v482_v2 = vmax.f32 %v451_v57, %v467_v61 }
 0x2ca   : > { %v853_v62 = vpop.f32.mrf.mxu0 }
 0x2cb   : > { %v485_v63 = vmax.f32 %v849_v58, %v853_v62 }
 0x2cc   : > { %v470_v0 = vpop.f32.mrf.mxu0 }
 0x2cd   : > { %v483_v3 = vmax.f32 %v454_v59, %v470_v0  ;;  %v487_v4 = vmax.f32 %v484_v1, %v485_v63  ;;  %v673_v1 = vstv %s672_s8  ;;  %s1053_s8 = scalar_lea.vmem %s1052_s28, 1024 }
 0x2ce   : > { %p1055_p10 = scmp.lt.s32.totalorder %s1053_s8, %s1047_s29 }
 0x2cf   : > { %v486_v5 = vmax.f32 %v482_v2, %v483_v3  ;;  %v670_v3 = vld [vmem:[%s667_s20 + $0x20] sm:$0xff] }
 0x2d0   : > { %p1056_p11 = por %p1055_p10, %p1054_p9 }
 0x2d1   : > { %v488_v6 = vmax.f32 %v486_v5, %v487_v4 }
 0x2d2   : > { %p1057_p13 = pnand %p1056_p11, %p1050_p8 }
 0x2d3   : > { %v489_v7 = vrot.slane %v488_v6, 4 }
 0x2d5   : > { %v490_v8 = vmax.f32 %v488_v6, %v489_v7  ;;  %v668_v6 = vld [vmem:[%s667_s20] sm:$0xff] }
 0x2d7   : > { %v491_v9 = vrot.slane %v490_v8, 2 }
 0x2d9   : > { %v492_v10 = vmax.f32 %v490_v8, %v491_v9 }
 0x2db   : > { %v493_v11 = vrot.slane %v492_v10, 1 }
 0x2dd   : > { %v494_v12 = vmax.f32 %v492_v10, %v493_v11  ;;  %v671_v10 = vld [vmem:[%s667_s20 + $0x30] sm:$0xff] }
 0x2df   : > { %v499_v13 = vsub.f32 %v467_v61, %v494_v12  ;;  %v500_v14 = vsub.f32 %v470_v0, %v494_v12  ;;  %v501_v15 = vsub.f32 %v852_v60, %v494_v12  ;;  %v502_v16 = vsub.f32 %v853_v62, %v494_v12  ;;  %v1008_v0 = vld [vmem:[%s1445_s2 + $0x8] sm:$0xff]  }
 0x2e0   : > { %v497_v17 = vsub.f32 %v848_v56, %v494_v12  ;;  %v498_v18 = vsub.f32 %v849_v58, %v494_v12  ;;  %v495_v19 = vsub.f32 %v451_v57, %v494_v12  ;;  %v496_v20 = vsub.f32 %v454_v59, %v494_v12 }
 0x2e1   : > { %v506_v21 = vpack.c.bf16 %v502_v16, %v501_v15  ;;  %v505_v22 = vpack.c.bf16 %v500_v14, %v499_v13  ;;  %v669_v14 = vld [vmem:[%s667_s20 + $0x10] sm:$0xff] }
 0x2e2   : > { %v504_v23 = vpack.c.bf16 %v498_v18, %v497_v17  ;;  %v503_v24 = vpack.c.bf16 %v496_v20, %v495_v19 }
 0x2e3   : > { %v517_v25 = vmul.bf16 1069105081, %v506_v21  ;;  %v514_v28 = vmul.bf16 1069105081, %v505_v22 }
 0x2e4   : > { %v511_v26 = vmul.bf16 1069105081, %v504_v23  ;;  %v508_v27 = vmul.bf16 1069105081, %v503_v24 }
 0x2e5   : > { %1009 = vpow.bf16 %v517_v25 }
 0x2e6   : > { %1011 = vpow.bf16 %v511_v26 }
 0x2e7   : > { %1013 = vpow.bf16 %v508_v27 }
 0x2e8   : > { %1015 = vpow.bf16 %v514_v28 }
 0x2f3   : > { %v1010_v29 = vpop.eup %1009 }
 0x2f4   : > { %v1012_v30 = vpop.eup %1011  ;;  %855 = vmatpush3.bf16.msra.mxu1 %v1010_v29  ;;  %v525_v44 = vunpack.c.l.bf16 %v1010_v29  ;;  %v526_v46 = vunpack.c.h.bf16 %v1010_v29 }
 0x2f5   : > { %v1014_v31 = vpop.eup %1013  ;;  %856 = vmatprep.subr.bf16.mxu1 %v1174_v55  ;;  %v521_v35 = vunpack.c.l.bf16 %v1012_v30  ;;  %v522_v37 = vunpack.c.h.bf16 %v1012_v30 }
 0x2f6   : > { %v519_v32 = vunpack.c.l.bf16 %v1014_v31  ;;  %v520_v33 = vunpack.c.h.bf16 %v1014_v31  ;;  %v1016_v34 = vpop.eup %1015 }
 0x2f7   : > { %v523_v39 = vunpack.c.l.bf16 %v1016_v34  ;;  %v524_v41 = vunpack.c.h.bf16 %v1016_v34 }
 0x2f8   : > { %857 = vmatpush3.bf16.msra.mxu1 %v1016_v34  ;;  %v527_v36 = vadd.f32 %v520_v33, %v519_v32 }
 0x2f9   : > { %858 = vmatprep.subr.bf16.mxu1 %v1174_v55 }
 0x2fa   : > { %v528_v38 = vadd.f32 %v527_v36, %v521_v35 }
 0x2fc   : > { %859 = vmatpush3.bf16.msra.mxu1 %v1012_v30  ;;  %v529_v40 = vadd.f32 %v528_v38, %v522_v37 }
 0x2fd   : > { %860 = vmatprep.subr.bf16.mxu1 %v1174_v55 }
 0x2fe   : > { %v530_v42 = vadd.f32 %v529_v40, %v523_v39 }
 0x300   : > { %861 = vmatpush3.bf16.msra.mxu1 %v1014_v31  ;;  %v531_v45 = vadd.f32 %v530_v42, %v524_v41 }
 0x302   : > { %v532_v47 = vadd.f32 %v531_v45, %v525_v44 }
 0x303   : > { %863 = vmatmul.mubr.msk.bf16.vlgmr.msra.gmra.mxu1 %vm547_vm5, %v1006_v43 }
 0x304   : > { %v533_v48 = vadd.f32 %v532_v47, %v526_v46 }
 0x306   : > { %v534_v50 = vrot.slane %v533_v48, 4 }
 0x308   : > { %v535_v51 = vadd.f32 %v534_v50, %v533_v48 }
 0x30a   : > { %v536_v52 = vrot.slane %v535_v51, 2 }
 0x30c   : > { %v537_v53 = vadd.f32 %v536_v52, %v535_v51 }
 0x30e   : > { %v538_v54 = vrot.slane %v537_v53, 1 }
 0x310   : > { %v539_v55 = vadd.f32 %v538_v54, %v537_v53 }
 0x312   : > { %1017 = vrcp.f32 %v539_v55 }
 0x31f   : > { %v1018_v58 = vpop.eup %1017 }
 0x3c3   : > { %v585_v56 = vpop.f32.mrf.mxu1 }
 0x3c4   : > { %v593_v60 = vmul.f32 %v1018_v58, %v585_v56 }
 0x3c5   : > { %v864_v57 = vpop.f32.mrf.mxu1 }
 0x3c7   : > { %v588_v59 = vpop.f32.mrf.mxu1 }
 0x3c8   : > { %v594_v61 = vmul.f32 %v1018_v58, %v588_v59 }
 0x3c9   : > { %v865_v62 = vpop.f32.mrf.mxu1 }
 0x3ca   : > { %v599_v63 = vpack.c.bf16 %v594_v61, %v593_v60 }
 0x3cc   : > { %866 = vmatprep.subr.bf16.mxu0 %v599_v63 }
 0x3cd   : > { %867 = vmatpush3.bf16.msra.mxu0 %v599_v63 }
 0x3d0   : > { %869 = vmatmul.mubr.msk.bf16.vlgmr.msra.gmra.mxu0 %vm610_vm6, %v1008_v0 }
 0x490   : > { %v870_v2 = vpop.f32.mrf.mxu0 }
 0x491   : > { %v676_v4 = vmul.f32 %v870_v2, %v673_v1 }
 0x492   : > { %v651_v5 = vpop.f32.mrf.mxu0 }
 0x493   : > { %v680_v7 = vadd.f32 %v676_v4, %v670_v3  ;;  %v674_v8 = vmul.f32 %v673_v1, %v651_v5 }
 0x494   : > { %v871_v9 = vpop.f32.mrf.mxu0 }
 0x495   : > { %684 = vst [vmem:[%s1336_s11 + $0x10] sm:$0xff] %v680_v7  ;;  %v678_v11 = vadd.f32 %v674_v8, %v668_v6  ;;  %v677_v12 = vmul.f32 %v871_v9, %v673_v1 }
 0x496   : > { %v654_v13 = vpop.f32.mrf.mxu0 }
 0x497   : > { %682 = vst [vmem:[%s1336_s11] sm:$0xff] %v678_v11  ;;  %v681_v15 = vadd.f32 %v677_v12, %v671_v10  ;;  %v675_v16 = vmul.f32 %v673_v1, %v654_v13 }
 0x499   : > { %685 = vst [vmem:[%s1336_s11 + $0x18] sm:$0xff] %v681_v15  ;;  %v679_v17 = vadd.f32 %v675_v16, %v669_v14 }
 0x49b   : > { %683 = vst [vmem:[%s1336_s11 + $0x8] sm:$0xff] %v679_v17 }
 0x49c   : > { %1060 = shalt.err (!%p1057_p13)
}
 0x49d   : > { %s1061_s5 = scalar_lea.hbm %s1375_s6, 512  ;;  %s1065_s20 = scalar_lea.hbm %s1447_s4, 2048 }
 0x49e   : > { %p1062_p0 = scmp.ne.s32.totalorder %s1375_s6, %s1061_s5  ;;  %p1066_p6 = scmp.lt.s32.totalorder %s1375_s6, %s1447_s4 }
 0x49f   : > { %p1067_p4 = scmp.lt.s32.totalorder %s1065_s20, %s1061_s5 }
 0x4a0   : > { %p1063_p3 = pnand %p1062_p0, %p1290_p12 }
 0x4a1   : > { %p1068_p7 = por %p1067_p4, %p1066_p6 }
 0x4a2   : > { %p1064_p1 = pneg %p1063_p3 }
 0x4a4   : > { %p1069_p5 = pnand %p1068_p7, %p1064_p1 }
 0x4a6   : > { %1072 = shalt.err (!%p1069_p5)
}
 0x4a7   : > { %s1177_s16 = smov 128   ;;  %s1178_s23 = smov 256  }
 0x4a8   : > { %s1179_s10 = smov 8  }
 0x4a9   : > { %879 = dma.vmem_to_hbm [thread:$0]  (%p1290_p12), %s1377_s24, 512, %s1375_s6, %s1383_s27, %s1177_s16, %s1178_s23, %s1179_s10  }
 0x4aa PF: > { %p890_p8 = scmp.ge.s32.totalorder %s1167_s26, 2  ;;  %s716_s29 = sand.u32 1, %s1127_s17  }
 0x4ab   : > { %s717_s9 = scalar_lea.sflag [#allocation8], %s716_s29 }
 0x4ac   : > { %p886_p9 = pnand %p890_p8, %p1303_p2 }
 0x4ae   : > { %p887_p10 = pneg %p886_p9 }
 0x4b0   : > { %1122 = dma.done.wait (%p887_p10), %s717_s9, 512  }
 0x4b1   : > { %1124 = vsyncadd (%p887_p10), %s717_s9, 4294966784  ;;  %s21_s26 = sadd.s32 1, %s1167_s26   ;;  %s1459_s24 = sld [smem:[#allocation12_spill]] }
 0x4b2   : > { %p18_p11 = scmp.ge.s32.totalorder %s21_s26, 6   ;;  %s1460_s12 = sld [smem:[#allocation13_spill]] }
 0x4b3   : > { %s1461_s25 = sld [smem:[#allocation14_spill]]  ;;  %s1462_s17 = smov %s1131_s18 }
 0x4b4   : > { %s1463_s18 = smov %s1135_s19  ;;  %s1464_s19 = smov %s1298_s14 }
 0x4b5   : > { %s1465_s20 = smov %s1143_s21  ;;  %s1466_s21 = smov %s1147_s22 }
 0x4b6   : > { %s1467_s22 = smov %s1295_s13  ;;  %s1468_s23 = smov %s1159_s3 }
 0x4b7   :  { %20 = sbr.rel (!%p18_p11) target bundleno = 11 (0xb), region = 87 }
 0x4b8   : > { %s1469_s3 = smov %s1460_s12 }
 0x4bc   :  { %722 = vsyncpa [#allocation7], 1 }
 0x4bd   :  { %724 = vsyncpa [#allocation7 + $0x1], 1 }
 0x4be   :  { %725 = vsyncpa [#allocation8], 1 }
 0x4bf   :  { %727 = vsyncpa [#allocation8 + $0x1], 1 }

</bundles_post_ra>
